<compile_context>
chip_gen: v7x
topology: tpu7x:2x2x1
jax: 0.10.0
libtpu: 0.0.40
codegen_flags: <defaults>
</compile_context>

<pallas_src>
import functools

import jax
import jax.numpy as jnp
from jax import lax
from jax.experimental import pallas as pl
from jax.experimental.pallas import tpu as pltpu


def gin_kernel(row_off_ref, src_ref,                       # scalar prefetch (SMEM)
               x_ref, batch_ref,                           # inputs (VMEM)
               w1_ref, b1_ref, w2_ref, b2_ref,
               bn_scale_ref, bn_shift_ref,
               wf1_ref, bf1_ref, wf2_ref, bf2_ref,
               out_ref,                                    # output (VMEM, lane-dense)
               agg_ref, pool_ref):                         # VMEM scratch
    i = pl.program_id(0)
    tm, f_pad = agg_ref.shape
    g_pad = pool_ref.shape[0]
    base = pl.multiple_of(i * tm, 8)                       # first node row of this block

    @pl.when(i == 0)
    def _():
        pool_ref[...] = jnp.zeros_like(pool_ref)

    # ---- GINConv neighbor sums via CSR (edges sorted by dst), O(E) work -----
    def row_body(r, carry):
        node = base + r
        start = row_off_ref[node]
        end = row_off_ref[node + 1]

        def edge_body(e, acc):
            s = src_ref[e]
            return acc + x_ref[pl.ds(s, 1), :]

        nbr = lax.fori_loop(start, end, edge_body,
                            jnp.zeros((1, f_pad), jnp.float32))
        agg_ref[pl.ds(r, 1), :] = nbr
        return carry

    lax.fori_loop(0, tm, row_body, 0)

    # (1 + eps) * x + sum_{j in N(i)} x_j   (eps = 0); self term added vectorized.
    agg = agg_ref[...] + x_ref[pl.ds(base, tm), :]

    # ---- nn1 = Linear -> ReLU -> Linear --------------------------------------
    h = jnp.dot(agg, w1_ref[...], preferred_element_type=jnp.float32) + b1_ref[...]
    h = jnp.maximum(h, 0.0)
    h = jnp.dot(h, w2_ref[...], preferred_element_type=jnp.float32) + b2_ref[...]

    # ---- F.relu after conv1, then BatchNorm1d (eval, folded scale/shift) -----
    h = jnp.maximum(h, 0.0)
    h = h * bn_scale_ref[...] + bn_shift_ref[...]

    # ---- global_add_pool: on-the-fly one-hot (no dense [G, N] matrix) --------
    gid = batch_ref[...]                                   # (tm, 1) int32, pad rows = -1
    one_hot = (lax.broadcasted_iota(jnp.int32, (tm, g_pad), 1) == gid)
    pool_ref[...] += lax.dot_general(
        one_hot.astype(jnp.float32), h,
        dimension_numbers=(((0,), (0,)), ((), ())),
        preferred_element_type=jnp.float32)                # (g_pad, d_pad)

    # ---- head, once after the last node block --------------------------------
    @pl.when(i == pl.num_programs(0) - 1)
    def _():
        g = pool_ref[...]
        z = jnp.dot(g, wf1_ref[...], preferred_element_type=jnp.float32) + bf1_ref[...]
        z = jnp.maximum(z, 0.0)
        # dropout(p=0.5): identity in eval mode.
        out_ref[...] = (jnp.dot(z, wf2_ref[...], preferred_element_type=jnp.float32)
                        + bf2_ref[...])


def _round_up(v, m):
    return (v + m - 1) // m * m


@functools.partial(jax.jit, static_argnames=("num_graphs", "block_nodes"))
def gin_forward(x, edge_index, batch, params, num_graphs, block_nodes=128):
    n, fin = x.shape
    dim = params["w2"].shape[0]
    num_edges = edge_index.shape[1]
    f32 = jnp.float32

    F_PAD = _round_up(max(fin, 1), 128)
    D_PAD = _round_up(dim, 128)
    OUT_PAD = 128                                  # lane-dense output; slice to 1 col later
    G_PAD = _round_up(max(num_graphs, 1), 8)
    TM = max(8, _round_up(block_nodes, 8))
    N_PAD = _round_up(n, TM)
    num_blocks = N_PAD // TM

    # ---- CSR (sorted-by-dst) edge structure: O(E) ints instead of O(N^2) A ---
    src = edge_index[0].astype(jnp.int32)
    dst = edge_index[1].astype(jnp.int32)
    counts = jnp.zeros((N_PAD,), jnp.int32).at[dst].add(1)
    row_off = jnp.concatenate(
        [jnp.zeros((1,), jnp.int32), jnp.cumsum(counts).astype(jnp.int32)])
    src_sorted = src[jnp.argsort(dst)]
    if num_edges == 0:
        src_sorted = jnp.zeros((1,), jnp.int32)

    # ---- padded node features / per-node graph id (padding rows -> -1) -------
    x_pad = jnp.zeros((N_PAD, F_PAD), f32).at[:n, :fin].set(x.astype(f32))
    batch_col = jnp.full((N_PAD, 1), -1, jnp.int32).at[:n, 0].set(batch.astype(jnp.int32))

    # ---- fold BatchNorm1d (eval) into scale/shift; pad weights to 128 lanes --
    bn_eps = 1e-5
    scale = params["bn_gamma"] / jnp.sqrt(params["bn_var"] + bn_eps)
    shift = params["bn_beta"] - params["bn_mean"] * scale

    def pad2(w, r, c):
        return jnp.zeros((r, c), f32).at[:w.shape[0], :w.shape[1]].set(w.astype(f32))

    def pad_row(v, c):
        return jnp.zeros((1, c), f32).at[0, :v.shape[0]].set(v.astype(f32))

    w1_p = pad2(params["w1"], F_PAD, D_PAD)
    b1_p = pad_row(params["b1"], D_PAD)
    w2_p = pad2(params["w2"], D_PAD, D_PAD)
    b2_p = pad_row(params["b2"], D_PAD)
    bn_scale_p = pad_row(scale, D_PAD)
    bn_shift_p = pad_row(shift, D_PAD)
    wf1_p = pad2(params["wf1"], D_PAD, D_PAD)
    bf1_p = pad_row(params["bf1"], D_PAD)
    wf2_p = pad2(params["wf2"], D_PAD, OUT_PAD)
    bf2_p = pad_row(params["bf2"], OUT_PAD)

    # ---- advisory cost estimate ----------------------------------------------
    e_eff = max(num_edges, 1)
    flops = (2 * e_eff * F_PAD
             + 2 * N_PAD * F_PAD * D_PAD
             + 2 * N_PAD * D_PAD * D_PAD
             + 2 * N_PAD * G_PAD * D_PAD
             + 2 * G_PAD * D_PAD * D_PAD
             + 2 * G_PAD * D_PAD * OUT_PAD)
    bytes_accessed = 4 * (x_pad.size + batch_col.size + row_off.size + src_sorted.size
                          + w1_p.size + b1_p.size + w2_p.size + b2_p.size
                          + bn_scale_p.size + bn_shift_p.size
                          + wf1_p.size + bf1_p.size + wf2_p.size + bf2_p.size
                          + G_PAD * OUT_PAD)
    cost = pl.CostEstimate(flops=flops, transcendentals=0, bytes_accessed=bytes_accessed)

    grid_spec = pltpu.PrefetchScalarGridSpec(
        num_scalar_prefetch=2,                               # row_off, src_sorted -> SMEM
        grid=(num_blocks,),
        in_specs=[
            pl.BlockSpec((N_PAD, F_PAD), lambda i, *_: (0, 0)),    # x (full: gather source)
            pl.BlockSpec((TM, 1), lambda i, *_: (i, 0)),           # graph id per node (blocked)
            pl.BlockSpec((F_PAD, D_PAD), lambda i, *_: (0, 0)),    # w1
            pl.BlockSpec((1, D_PAD), lambda i, *_: (0, 0)),        # b1
            pl.BlockSpec((D_PAD, D_PAD), lambda i, *_: (0, 0)),    # w2
            pl.BlockSpec((1, D_PAD), lambda i, *_: (0, 0)),        # b2
            pl.BlockSpec((1, D_PAD), lambda i, *_: (0, 0)),        # bn scale
            pl.BlockSpec((1, D_PAD), lambda i, *_: (0, 0)),        # bn shift
            pl.BlockSpec((D_PAD, D_PAD), lambda i, *_: (0, 0)),    # wf1
            pl.BlockSpec((1, D_PAD), lambda i, *_: (0, 0)),        # bf1
            pl.BlockSpec((D_PAD, OUT_PAD), lambda i, *_: (0, 0)),  # wf2 (lane-dense padded)
            pl.BlockSpec((1, OUT_PAD), lambda i, *_: (0, 0)),      # bf2
        ],
        out_specs=pl.BlockSpec((G_PAD, OUT_PAD), lambda i, *_: (0, 0)),
        scratch_shapes=[
            pltpu.VMEM((TM, F_PAD), jnp.float32),    # per-block neighbor sums
            pltpu.VMEM((G_PAD, D_PAD), jnp.float32), # pooled-sum accumulator
        ],
    )

    out_pad = pl.pallas_call(
        gin_kernel,
        out_shape=jax.ShapeDtypeStruct((G_PAD, OUT_PAD), f32),
        grid_spec=grid_spec,
        compiler_params=pltpu.CompilerParams(
            dimension_semantics=("arbitrary",),      # pooled reduction carried in scratch
            vmem_limit_bytes=32 * 1024 * 1024,       # safe on v5e/v6e/v7x; footprint is small
        ),
        cost_estimate=cost,
    )(row_off, src_sorted, x_pad, batch_col,
      w1_p, b1_p, w2_p, b2_p, bn_scale_p, bn_shift_p,
      wf1_p, bf1_p, wf2_p, bf2_p)

    return out_pad[:num_graphs, :1]


def gin_reference(x, edge_index, batch, params, num_graphs):
    """Plain-JAX reference (eval-mode semantics)."""
    src, dst = edge_index[0], edge_index[1]
    agg = x + jnp.zeros_like(x).at[dst].add(x[src])
    h = jnp.maximum(agg @ params["w1"] + params["b1"], 0.0)
    h = h @ params["w2"] + params["b2"]
    h = jnp.maximum(h, 0.0)
    scale = params["bn_gamma"] / jnp.sqrt(params["bn_var"] + 1e-5)
    h = (h - params["bn_mean"]) * scale + params["bn_beta"]
    g = jnp.zeros((num_graphs, h.shape[1]), h.dtype).at[batch].add(h)
    z = jnp.maximum(g @ params["wf1"] + params["bf1"], 0.0)
    return z @ params["wf2"] + params["bf2"]


def init_params(key, input_dim, dim=32):
    ks = jax.random.split(key, 8)
    s = 0.1
    return {
        "w1": s * jax.random.normal(ks[0], (input_dim, dim), jnp.float32),
        "b1": s * jax.random.normal(ks[1], (dim,), jnp.float32),
        "w2": s * jax.random.normal(ks[2], (dim, dim), jnp.float32),
        "b2": s * jax.random.normal(ks[3], (dim,), jnp.float32),
        "bn_gamma": jnp.ones((dim,), jnp.float32),
        "bn_beta": jnp.zeros((dim,), jnp.float32),
        "bn_mean": jnp.zeros((dim,), jnp.float32),
        "bn_var": jnp.ones((dim,), jnp.float32),
        "wf1": s * jax.random.normal(ks[4], (dim, dim), jnp.float32),
        "bf1": s * jax.random.normal(ks[5], (dim,), jnp.float32),
        "wf2": s * jax.random.normal(ks[6], (dim, 1), jnp.float32),
        "bf2": s * jax.random.normal(ks[7], (1,), jnp.float32),
    }


if __name__ == "__main__":
    key = jax.random.PRNGKey(0)
    k_x, k_p = jax.random.split(key)

    # Small synthetic batched graph: 2 graphs x 8 nodes each, bidirectional ring
    # edges inside each graph.
    num_nodes, input_dim, dim, num_graphs = 16, 8, 32, 2
    x = jax.random.normal(k_x, (num_nodes, input_dim), jnp.float32)

    nodes_per_graph = num_nodes // num_graphs
    src_list, dst_list = [], []
    for g in range(num_graphs):
        base = g * nodes_per_graph
        for i in range(nodes_per_graph):
            a = base + i
            b = base + (i + 1) % nodes_per_graph
            src_list += [a, b]
            dst_list += [b, a]
    edge_index = jnp.array([src_list, dst_list], dtype=jnp.int32)     # [2, E]
    batch = jnp.repeat(jnp.arange(num_graphs, dtype=jnp.int32), nodes_per_graph)

    params = init_params(k_p, input_dim, dim)

    # block_nodes=8 -> 2 node blocks, exercising the cross-block pooled accumulation.
    out = gin_forward(x, edge_index, batch, params,
                      num_graphs=num_graphs, block_nodes=8)
    jax.block_until_ready(out)
    assert out.shape == (num_graphs, 1)

    ref = gin_reference(x, edge_index, batch, params, num_graphs)
    assert jnp.allclose(out, ref, rtol=1e-4, atol=1e-4), (out, ref)

    print("KERNEL_OK")
</pallas_src>

<mosaic_0001>
module attributes {stable_mosaic.version = 11 : i64} {
  func.func private @main(%arg0: i32) attributes {dimension_semantics = [#tpu.dimension_semantics<core_parallel>], iteration_bounds = array<i64: 2>, tpu.core_type = #tpu.core_type<sc_scalar_subcore>, window_params = []} {
    return
  }
}

module attributes {stable_mosaic.version = 11 : i64} {
  func.func private @main(%arg0: i32) attributes {dimension_semantics = [#tpu.dimension_semantics<core_parallel>], iteration_bounds = array<i64: 2>, tpu.core_type = #tpu.core_type<sc_scalar_subcore>, window_params = []} {
    return
  }
}

module attributes {stable_mosaic.version = 11 : i64} {
  func.func @gin_kernel(%arg0: i32, %arg1: memref<17xi32, #tpu.memory_space<smem>>, %arg2: memref<32xi32, #tpu.memory_space<smem>>, %arg3: memref<16x128xf32, #tpu.memory_space<vmem>>, %arg4: memref<8x1xi32, #tpu.memory_space<vmem>>, %arg5: memref<128x128xf32, #tpu.memory_space<vmem>>, %arg6: memref<1x128xf32, #tpu.memory_space<vmem>>, %arg7: memref<128x128xf32, #tpu.memory_space<vmem>>, %arg8: memref<1x128xf32, #tpu.memory_space<vmem>>, %arg9: memref<1x128xf32, #tpu.memory_space<vmem>>, %arg10: memref<1x128xf32, #tpu.memory_space<vmem>>, %arg11: memref<128x128xf32, #tpu.memory_space<vmem>>, %arg12: memref<1x128xf32, #tpu.memory_space<vmem>>, %arg13: memref<128x128xf32, #tpu.memory_space<vmem>>, %arg14: memref<1x128xf32, #tpu.memory_space<vmem>>, %arg15: memref<8x128xf32, #tpu.memory_space<vmem>>, %arg16: memref<8x128xf32, #tpu.memory_space<vmem>>, %arg17: memref<8x128xf32, #tpu.memory_space<vmem>>) attributes {dimension_semantics = [#tpu.dimension_semantics<arbitrary>], iteration_bounds = array<i64: 2>, scalar_prefetch = 2 : i64, scratch_operands = 2 : i64, tpu.core_type = #tpu.core_type<tc>, window_params = [{pipeline_mode = #tpu.pipeline_mode<synchronous>, transform_indices = @transform_0, window_bounds = array<i64: 16, 128>}, {transform_indices = @transform_1, window_bounds = array<i64: 8, 1>}, {pipeline_mode = #tpu.pipeline_mode<synchronous>, transform_indices = @transform_2, window_bounds = array<i64: 128, 128>}, {pipeline_mode = #tpu.pipeline_mode<synchronous>, transform_indices = @transform_3, window_bounds = array<i64: 1, 128>}, {pipeline_mode = #tpu.pipeline_mode<synchronous>, transform_indices = @transform_4, window_bounds = array<i64: 128, 128>}, {pipeline_mode = #tpu.pipeline_mode<synchronous>, transform_indices = @transform_5, window_bounds = array<i64: 1, 128>}, {pipeline_mode = #tpu.pipeline_mode<synchronous>, transform_indices = @transform_6, window_bounds = array<i64: 1, 128>}, {pipeline_mode = #tpu.pipeline_mode<synchronous>, transform_indices = @transform_7, window_bounds = array<i64: 1, 128>}, {pipeline_mode = #tpu.pipeline_mode<synchronous>, transform_indices = @transform_8, window_bounds = array<i64: 128, 128>}, {pipeline_mode = #tpu.pipeline_mode<synchronous>, transform_indices = @transform_9, window_bounds = array<i64: 1, 128>}, {pipeline_mode = #tpu.pipeline_mode<synchronous>, transform_indices = @transform_10, window_bounds = array<i64: 128, 128>}, {pipeline_mode = #tpu.pipeline_mode<synchronous>, transform_indices = @transform_11, window_bounds = array<i64: 1, 128>}, {pipeline_mode = #tpu.pipeline_mode<synchronous>, transform_indices = @transform_12, window_bounds = array<i64: 8, 128>}]} {
    %c8_i32 = arith.constant 8 : i32
    %0 = arith.muli %arg0, %c8_i32 : i32
    %1 = tpu.assume_multiple %0, 8 : i32
    %c0_i32 = arith.constant 0 : i32
    %2 = arith.cmpi eq, %arg0, %c0_i32 : i32
    %3 = arith.extui %2 : i1 to i32
    %c0_i32_0 = arith.constant 0 : i32
    %4 = arith.cmpi ne, %3, %c0_i32_0 : i32
    scf.if %4 {
      %cst_30 = arith.constant 0.000000e+00 : f32
      %43 = vector.broadcast %cst_30 : f32 to vector<8x128xf32>
      %c0_31 = arith.constant 0 : index
      %c0_32 = arith.constant 0 : index
      %44 = vector.load %arg17[%c0_31, %c0_32] : memref<8x128xf32, #tpu.memory_space<vmem>>, vector<8x128xf32>
      tpu.vector_store %arg17[%c0_31, %c0_32], %43 {strides = array<i32>} : memref<8x128xf32, #tpu.memory_space<vmem>>, vector<8x128xf32>,
    } else {
    }
    %c0_i32_1 = arith.constant 0 : i32
    %c8_i32_2 = arith.constant 8 : i32
    %5 = arith.addi %c0_i32_1, %c8_i32_2 : i32
    %c1_i32 = arith.constant 1 : i32
    scf.for %arg18 = %c0_i32_1 to %5 step %c1_i32  : i32 {
      %43 = arith.addi %1, %arg18 : i32
      %44 = arith.index_cast %43 : i32 to index
      %45 = memref.load %arg1[%44] : memref<17xi32, #tpu.memory_space<smem>>
      %c1_i32_30 = arith.constant 1 : i32
      %46 = arith.addi %43, %c1_i32_30 : i32
      %47 = arith.index_cast %46 : i32 to index
      %48 = memref.load %arg1[%47] : memref<17xi32, #tpu.memory_space<smem>>
      %cst_31 = arith.constant 0.000000e+00 : f32
      %49 = vector.broadcast %cst_31 : f32 to vector<1x128xf32>
      %50 = arith.subi %48, %45 : i32
      %51 = arith.addi %45, %50 : i32
      %c1_i32_32 = arith.constant 1 : i32
      %52 = scf.for %arg19 = %45 to %51 step %c1_i32_32 iter_args(%arg20 = %49) -> (vector<1x128xf32>)  : i32 {
        %55 = arith.index_cast %arg19 : i32 to index
        %56 = memref.load %arg2[%55] : memref<32xi32, #tpu.memory_space<smem>>
        %57 = arith.index_cast %56 : i32 to index
        %c0_34 = arith.constant 0 : index
        %58 = vector.load %arg3[%57, %c0_34] : memref<16x128xf32, #tpu.memory_space<vmem>>, vector<1x128xf32>
        %59 = arith.addf %arg20, %58 : vector<1x128xf32>
        scf.yield %59 : vector<1x128xf32>
      }
      %53 = arith.index_cast %arg18 : i32 to index
      %c0_33 = arith.constant 0 : index
      %54 = vector.load %arg16[%53, %c0_33] : memref<8x128xf32, #tpu.memory_space<vmem>>, vector<1x128xf32>
      tpu.vector_store %arg16[%53, %c0_33], %52 {strides = array<i32>} : memref<8x128xf32, #tpu.memory_space<vmem>>, vector<1x128xf32>,
    }
    %c8_i32_3 = arith.constant 8 : i32
    %c0 = arith.constant 0 : index
    %c0_4 = arith.constant 0 : index
    %6 = vector.load %arg16[%c0, %c0_4] : memref<8x128xf32, #tpu.memory_space<vmem>>, vector<8x128xf32>
    %7 = arith.index_cast %1 : i32 to index
    %c0_5 = arith.constant 0 : index
    %8 = vector.load %arg3[%7, %c0_5] : memref<16x128xf32, #tpu.memory_space<vmem>>, vector<8x128xf32>
    %9 = arith.addf %6, %8 : vector<8x128xf32>
    %c0_6 = arith.constant 0 : index
    %c0_7 = arith.constant 0 : index
    %10 = vector.load %arg5[%c0_6, %c0_7] : memref<128x128xf32, #tpu.memory_space<vmem>>, vector<128x128xf32>
    %cst = arith.constant dense<0.000000e+00> : vector<8x128xf32>
    %11 = tpu.matmul %9, %10, %cst {dimension_numbers = #tpu.dot_dimension_numbers<[1], [0], [0], [1], [0, 0, 1, 1], [], []>} : vector<8x128xf32>, vector<128x128xf32>, vector<8x128xf32> -> vector<8x128xf32>
    %c0_8 = arith.constant 0 : index
    %c0_9 = arith.constant 0 : index
    %12 = vector.load %arg6[%c0_8, %c0_9] : memref<1x128xf32, #tpu.memory_space<vmem>>, vector<1x128xf32>
    %13 = vector.broadcast %12 : vector<1x128xf32> to vector<8x128xf32>
    %14 = arith.addf %11, %13 : vector<8x128xf32>
    %cst_10 = arith.constant 0.000000e+00 : f32
    %15 = vector.broadcast %cst_10 : f32 to vector<8x128xf32>
    %16 = arith.maximumf %14, %15 : vector<8x128xf32>
    %c0_11 = arith.constant 0 : index
    %c0_12 = arith.constant 0 : index
    %17 = vector.load %arg7[%c0_11, %c0_12] : memref<128x128xf32, #tpu.memory_space<vmem>>, vector<128x128xf32>
    %cst_13 = arith.constant dense<0.000000e+00> : vector<8x128xf32>
    %18 = tpu.matmul %16, %17, %cst_13 {dimension_numbers = #tpu.dot_dimension_numbers<[1], [0], [0], [1], [0, 0, 1, 1], [], []>} : vector<8x128xf32>, vector<128x128xf32>, vector<8x128xf32> -> vector<8x128xf32>
    %c0_14 = arith.constant 0 : index
    %c0_15 = arith.constant 0 : index
    %19 = vector.load %arg8[%c0_14, %c0_15] : memref<1x128xf32, #tpu.memory_space<vmem>>, vector<1x128xf32>
    %20 = vector.broadcast %19 : vector<1x128xf32> to vector<8x128xf32>
    %21 = arith.addf %18, %20 : vector<8x128xf32>
    %cst_16 = arith.constant 0.000000e+00 : f32
    %22 = vector.broadcast %cst_16 : f32 to vector<8x128xf32>
    %23 = arith.maximumf %21, %22 : vector<8x128xf32>
    %c0_17 = arith.constant 0 : index
    %c0_18 = arith.constant 0 : index
    %24 = vector.load %arg9[%c0_17, %c0_18] : memref<1x128xf32, #tpu.memory_space<vmem>>, vector<1x128xf32>
    %25 = vector.broadcast %24 : vector<1x128xf32> to vector<8x128xf32>
    %26 = arith.mulf %23, %25 : vector<8x128xf32>
    %c0_19 = arith.constant 0 : index
    %c0_20 = arith.constant 0 : index
    %27 = vector.load %arg10[%c0_19, %c0_20] : memref<1x128xf32, #tpu.memory_space<vmem>>, vector<1x128xf32>
    %28 = vector.broadcast %27 : vector<1x128xf32> to vector<8x128xf32>
    %29 = arith.addf %26, %28 : vector<8x128xf32>
    %c0_21 = arith.constant 0 : index
    %c0_22 = arith.constant 0 : index
    %30 = vector.load %arg4[%c0_21, %c0_22] : memref<8x1xi32, #tpu.memory_space<vmem>>, vector<8x1xi32>
    %31 = tpu.iota {dimensions = array<i32: 1>} : vector<8x8xi32>
    %32 = vector.broadcast %30 : vector<8x1xi32> to vector<8x8xi32>
    %33 = arith.cmpi eq, %31, %32 : vector<8x8xi32>
    %c0_23 = arith.constant 0 : index
    %c0_24 = arith.constant 0 : index
    %34 = vector.load %arg17[%c0_23, %c0_24] : memref<8x128xf32, #tpu.memory_space<vmem>>, vector<8x128xf32>
    %35 = arith.extui %33 : vector<8x8xi1> to vector<8x8xi32>
    %36 = arith.sitofp %35 : vector<8x8xi32> to vector<8x8xf32>
    %cst_25 = arith.constant dense<0.000000e+00> : vector<8x128xf32>
    %37 = tpu.matmul %36, %29, %cst_25 {dimension_numbers = #tpu.dot_dimension_numbers<[0], [0], [1], [1], [0, 1, 1, 1], [], []>} : vector<8x8xf32>, vector<8x128xf32>, vector<8x128xf32> -> vector<8x128xf32>
    %38 = arith.addf %34, %37 : vector<8x128xf32>
    %c0_26 = arith.constant 0 : index
    %c0_27 = arith.constant 0 : index
    %39 = vector.load %arg17[%c0_26, %c0_27] : memref<8x128xf32, #tpu.memory_space<vmem>>, vector<8x128xf32>
    tpu.vector_store %arg17[%c0_26, %c0_27], %38 {strides = array<i32>} : memref<8x128xf32, #tpu.memory_space<vmem>>, vector<8x128xf32>,
    %c1_i32_28 = arith.constant 1 : i32
    %40 = arith.cmpi eq, %arg0, %c1_i32_28 : i32
    %41 = arith.extui %40 : i1 to i32
    %c0_i32_29 = arith.constant 0 : i32
    %42 = arith.cmpi ne, %41, %c0_i32_29 : i32
    scf.if %42 {
      %c0_30 = arith.constant 0 : index
      %c0_31 = arith.constant 0 : index
      %43 = vector.load %arg17[%c0_30, %c0_31] : memref<8x128xf32, #tpu.memory_space<vmem>>, vector<8x128xf32>
      %c0_32 = arith.constant 0 : index
      %c0_33 = arith.constant 0 : index
      %44 = vector.load %arg11[%c0_32, %c0_33] : memref<128x128xf32, #tpu.memory_space<vmem>>, vector<128x128xf32>
      %cst_34 = arith.constant dense<0.000000e+00> : vector<8x128xf32>
      %45 = tpu.matmul %43, %44, %cst_34 {dimension_numbers = #tpu.dot_dimension_numbers<[1], [0], [0], [1], [0, 0, 1, 1], [], []>} : vector<8x128xf32>, vector<128x128xf32>, vector<8x128xf32> -> vector<8x128xf32>
      %c0_35 = arith.constant 0 : index
      %c0_36 = arith.constant 0 : index
      %46 = vector.load %arg12[%c0_35, %c0_36] : memref<1x128xf32, #tpu.memory_space<vmem>>, vector<1x128xf32>
      %47 = vector.broadcast %46 : vector<1x128xf32> to vector<8x128xf32>
      %48 = arith.addf %45, %47 : vector<8x128xf32>
      %cst_37 = arith.constant 0.000000e+00 : f32
      %49 = vector.broadcast %cst_37 : f32 to vector<8x128xf32>
      %50 = arith.maximumf %48, %49 : vector<8x128xf32>
      %c0_38 = arith.constant 0 : index
      %c0_39 = arith.constant 0 : index
      %51 = vector.load %arg13[%c0_38, %c0_39] : memref<128x128xf32, #tpu.memory_space<vmem>>, vector<128x128xf32>
      %cst_40 = arith.constant dense<0.000000e+00> : vector<8x128xf32>
      %52 = tpu.matmul %50, %51, %cst_40 {dimension_numbers = #tpu.dot_dimension_numbers<[1], [0], [0], [1], [0, 0, 1, 1], [], []>} : vector<8x128xf32>, vector<128x128xf32>, vector<8x128xf32> -> vector<8x128xf32>
      %c0_41 = arith.constant 0 : index
      %c0_42 = arith.constant 0 : index
      %53 = vector.load %arg14[%c0_41, %c0_42] : memref<1x128xf32, #tpu.memory_space<vmem>>, vector<1x128xf32>
      %54 = vector.broadcast %53 : vector<1x128xf32> to vector<8x128xf32>
      %55 = arith.addf %52, %54 : vector<8x128xf32>
      %c0_43 = arith.constant 0 : index
      %c0_44 = arith.constant 0 : index
      %56 = vector.load %arg15[%c0_43, %c0_44] : memref<8x128xf32, #tpu.memory_space<vmem>>, vector<8x128xf32>
      tpu.vector_store %arg15[%c0_43, %c0_44], %55 {strides = array<i32>} : memref<8x128xf32, #tpu.memory_space<vmem>>, vector<8x128xf32>,
    } else {
    }
    return
  }
  func.func @transform_0(%arg0: i32, %arg1: memref<17xi32, #tpu.memory_space<smem>>, %arg2: memref<32xi32, #tpu.memory_space<smem>>) -> (i32, i32) {
    %c0_i32 = arith.constant 0 : i32
    %c0_i32_0 = arith.constant 0 : i32
    %c0_i32_1 = arith.constant 0 : i32
    return %c0_i32, %c0_i32_0 : i32, i32
  }
  func.func @transform_1(%arg0: i32, %arg1: memref<17xi32, #tpu.memory_space<smem>>, %arg2: memref<32xi32, #tpu.memory_space<smem>>) -> (i32, i32) {
    %c0_i32 = arith.constant 0 : i32
    %c0_i32_0 = arith.constant 0 : i32
    return %arg0, %c0_i32 : i32, i32
  }
  func.func @transform_2(%arg0: i32, %arg1: memref<17xi32, #tpu.memory_space<smem>>, %arg2: memref<32xi32, #tpu.memory_space<smem>>) -> (i32, i32) {
    %c0_i32 = arith.constant 0 : i32
    %c0_i32_0 = arith.constant 0 : i32
    %c0_i32_1 = arith.constant 0 : i32
    return %c0_i32, %c0_i32_0 : i32, i32
  }
  func.func @transform_3(%arg0: i32, %arg1: memref<17xi32, #tpu.memory_space<smem>>, %arg2: memref<32xi32, #tpu.memory_space<smem>>) -> (i32, i32) {
    %c0_i32 = arith.constant 0 : i32
    %c0_i32_0 = arith.constant 0 : i32
    %c0_i32_1 = arith.constant 0 : i32
    return %c0_i32, %c0_i32_0 : i32, i32
  }
  func.func @transform_4(%arg0: i32, %arg1: memref<17xi32, #tpu.memory_space<smem>>, %arg2: memref<32xi32, #tpu.memory_space<smem>>) -> (i32, i32) {
    %c0_i32 = arith.constant 0 : i32
    %c0_i32_0 = arith.constant 0 : i32
    %c0_i32_1 = arith.constant 0 : i32
    return %c0_i32, %c0_i32_0 : i32, i32
  }
  func.func @transform_5(%arg0: i32, %arg1: memref<17xi32, #tpu.memory_space<smem>>, %arg2: memref<32xi32, #tpu.memory_space<smem>>) -> (i32, i32) {
    %c0_i32 = arith.constant 0 : i32
    %c0_i32_0 = arith.constant 0 : i32
    %c0_i32_1 = arith.constant 0 : i32
    return %c0_i32, %c0_i32_0 : i32, i32
  }
  func.func @transform_6(%arg0: i32, %arg1: memref<17xi32, #tpu.memory_space<smem>>, %arg2: memref<32xi32, #tpu.memory_space<smem>>) -> (i32, i32) {
    %c0_i32 = arith.constant 0 : i32
    %c0_i32_0 = arith.constant 0 : i32
    %c0_i32_1 = arith.constant 0 : i32
    return %c0_i32, %c0_i32_0 : i32, i32
  }
  func.func @transform_7(%arg0: i32, %arg1: memref<17xi32, #tpu.memory_space<smem>>, %arg2: memref<32xi32, #tpu.memory_space<smem>>) -> (i32, i32) {
    %c0_i32 = arith.constant 0 : i32
    %c0_i32_0 = arith.constant 0 : i32
    %c0_i32_1 = arith.constant 0 : i32
    return %c0_i32, %c0_i32_0 : i32, i32
  }
  func.func @transform_8(%arg0: i32, %arg1: memref<17xi32, #tpu.memory_space<smem>>, %arg2: memref<32xi32, #tpu.memory_space<smem>>) -> (i32, i32) {
    %c0_i32 = arith.constant 0 : i32
    %c0_i32_0 = arith.constant 0 : i32
    %c0_i32_1 = arith.constant 0 : i32
    return %c0_i32, %c0_i32_0 : i32, i32
  }
  func.func @transform_9(%arg0: i32, %arg1: memref<17xi32, #tpu.memory_space<smem>>, %arg2: memref<32xi32, #tpu.memory_space<smem>>) -> (i32, i32) {
    %c0_i32 = arith.constant 0 : i32
    %c0_i32_0 = arith.constant 0 : i32
    %c0_i32_1 = arith.constant 0 : i32
    return %c0_i32, %c0_i32_0 : i32, i32
  }
  func.func @transform_10(%arg0: i32, %arg1: memref<17xi32, #tpu.memory_space<smem>>, %arg2: memref<32xi32, #tpu.memory_space<smem>>) -> (i32, i32) {
    %c0_i32 = arith.constant 0 : i32
    %c0_i32_0 = arith.constant 0 : i32
    %c0_i32_1 = arith.constant 0 : i32
    return %c0_i32, %c0_i32_0 : i32, i32
  }
  func.func @transform_11(%arg0: i32, %arg1: memref<17xi32, #tpu.memory_space<smem>>, %arg2: memref<32xi32, #tpu.memory_space<smem>>) -> (i32, i32) {
    %c0_i32 = arith.constant 0 : i32
    %c0_i32_0 = arith.constant 0 : i32
    %c0_i32_1 = arith.constant 0 : i32
    return %c0_i32, %c0_i32_0 : i32, i32
  }
  func.func @transform_12(%arg0: i32, %arg1: memref<17xi32, #tpu.memory_space<smem>>, %arg2: memref<32xi32, #tpu.memory_space<smem>>) -> (i32, i32) {
    %c0_i32 = arith.constant 0 : i32
    %c0_i32_0 = arith.constant 0 : i32
    %c0_i32_1 = arith.constant 0 : i32
    return %c0_i32, %c0_i32_0 : i32, i32
  }
}

</mosaic_0001>

<bundles_post_ra>
// kernel: gin_forward.1
= control target key start
LH: loop header
LB: loop body
LE: loop exit
PB: predicated region body
PF: predicated region fallthrough
CT: control target
= control target key end

     0   :  { %s1835_s0 = inlined_call_operand.vmem [shape: s32[17], index: 0, kind: input, shape index: {}]   ;;  %s1836_s2 = inlined_call_operand.vmem [shape: f32[16,128], index: 2, kind: input, shape index: {}]   ;;  %s1837_s3 = inlined_call_operand.vmem [shape: s32[16,1], index: 3, kind: input, shape index: {}]   ;;  %s1838_s4 = inlined_call_operand.vmem [shape: f32[128,128], index: 4, kind: input, shape index: {}]   ;;  %s1839_s5 = inlined_call_operand.vmem [shape: f32[1,128], index: 5, kind: input, shape index: {}]   ;;  %s1840_s6 = inlined_call_operand.vmem [shape: f32[128,128], index: 6, kind: input, shape index: {}]   ;;  %s1841_s7 = inlined_call_operand.vmem [shape: f32[1,128], index: 7, kind: input, shape index: {}]   ;;  %s1842_s8 = inlined_call_operand.vmem [shape: f32[1,128], index: 8, kind: input, shape index: {}]   ;;  %s1843_s9 = inlined_call_operand.vmem [shape: f32[1,128], index: 9, kind: input, shape index: {}]   ;;  %s1844_s10 = inlined_call_operand.vmem [shape: f32[128,128], index: 10, kind: input, shape index: {}]   ;;  %s1845_s11 = inlined_call_operand.vmem [shape: f32[1,128], index: 11, kind: input, shape index: {}]   ;;  %s1846_s12 = inlined_call_operand.vmem [shape: f32[128,128], index: 12, kind: input, shape index: {}]   ;;  %s1847_s13 = inlined_call_operand.vmem [shape: f32[1,128], index: 13, kind: input, shape index: {}]   ;;  %s1848_s14 = inlined_call_operand.vmem [shape: f32[8,128], index: 14, kind: output, shape index: {}]   ;;  %s1849_s1 = inlined_call_operand.vmem [shape: s32[32], index: 1, kind: input, shape index: {}]  }
   0x1   :  { %s19_s15 = sshll.u32 %s1835_s0, 4  ;;  %s23_s18 = sshll.u32 %s1849_s1, 4  ;;  %s20_s15 = int_to_ptr.vmem [resolvable:$true] %s19_s15  ;;  %s24_s18 = int_to_ptr.vmem [resolvable:$true] %s23_s18 }
   0x2   :  { %s1381_s19 = scalar_lea.vmem %s20_s15, 16  ;;  %p1386_p1 = scmp.lt.s32.totalorder %s20_s15, %s20_s15 }
   0x3   :  { %p1382_p0 = scmp.ne.s32.totalorder %s20_s15, %s1381_s19  ;;  %p1387_p2 = scmp.lt.s32.totalorder %s1381_s19, %s1381_s19 }
   0x5   :  { %p1388_p3 = por %p1387_p2, %p1386_p1 }
   0x7   :  { %p1389_p4 = pnand %p1388_p3, %p1382_p0 }
   0x9   :  { %1392 = shalt.err (!%p1389_p4)  }
   0xa   :  { %s1447_s20 = smov [#allocation5]   ;;  %s1393_s21 = scalar_lea.vmem %s24_s18, 16 }
   0xb   :  { %22 = dma.vmem_to_smem %s20_s15, 16, %s1447_s20, [#allocation4] }
   0xc   :  { %p1394_p5 = scmp.ne.s32.totalorder %s24_s18, %s1393_s21  ;;  %p1398_p6 = scmp.lt.s32.totalorder %s24_s18, %s24_s18 }
   0xd   :  { %p1399_p7 = scmp.lt.s32.totalorder %s1393_s21, %s1393_s21 }
   0xf   :  { %p1400_p8 = por %p1399_p7, %p1398_p6 }
  0x11   :  { %p1401_p9 = pnand %p1400_p8, %p1394_p5 }
  0x13   :  { %1404 = shalt.err (!%p1401_p9)  }
  0x14   :  { %s1448_s0 = smov [#allocation6]  }
  0x15   :  { %26 = dma.vmem_to_smem %s24_s18, 16, %s1448_s0, [#allocation4] }
  0x16   :  { %1425 = dma.done.wait [#allocation4], 32 }
  0x17   :  { %1426 = vsyncadd [#allocation4], 4294967264 }
  0x18   :  { %28 = sfence }
  0x19   :  { %s1538_s1 = smov 0  }
  0x1a LB: > { %s1544_s22 = sadd.s32 4294967295, %s1429_s1   ;;  %p1004_p10 = scmp.ge.s32.totalorder %s1429_s1, 1  ;;  %s1429_s1 = sphi %s1538_s1, %s34_s1  }
  0x1b   : > { %p368_p11 = scmp.lt.s32.totalorder %s1429_s1, 3 }
  0x1d   : > { %p369_p12 = pnand %p1004_p10, %p368_p11 }
  0x1e   : > { %p404_p13 = scmp.lt.s32.totalorder (!%p369_p12), %s1544_s22, 1  ;;  %s1006_s23 = sshll.u32 (!%p369_p12), %s1544_s22, 3 }
  0x1f   : > { %372 = sbr.rel (%p369_p12) target bundleno = 1201 (0x4b1), region = 68  ;;  %p1007_p0 = scmp.ne.s32.totalorder (!%p369_p12), %s1544_s22, 0 }
  0x26   : > { %s405_s24 = scalar_select %p404_p13, %s1544_s22, 1 }
  0x27   : > { %412 = sbr.rel (%p1007_p0) target bundleno = 46 (0x2e), region = 72  ;;  %v1449_v0 = vmov (!%p1007_p0), 0.0  }
  0x28   : > { %s1005_s25 = sshll.u32 %s405_s24, 3  ;;  %413 = vst [vmem:[#allocation3] sm:$0xff] (!%p1007_p0), %v1449_v0 }
  0x29   : > { %s1554_s28 = scalar_lea.vmem %s1837_s3, %s1005_s25 }
  0x2e PF: > { %s1557_s29 = smov 0  }
  0x2f LB: >> { %s420_s30 = sadd.s32 %s1433_s29, %s1006_s23  ;;  %v1443_v1 = vmov 0.0   ;;  %s1433_s29 = sphi %s1557_s29, %s419_s29  }
  0x30   : >> { %s421_s15 = sld [smem:[#allocation5 + %s420_s30]]   ;;  %s422_s16 = sadd.s32 1, %s420_s30 }
  0x31   : >> { %s423_s17 = sld [smem:[#allocation5 + %s422_s16]] }
  0x37   : >> { %p978_p1 = scmp.ge.s32.totalorder %s421_s15, %s423_s17 }
  0x38   : >> { %v1435_v2 = vmov (!%p978_p1), 0.0   ;;  %s1439_s18 = smov (!%p978_p1), %s421_s15  }
  0x39   : >> { %980 = sbr.rel (%p978_p1) target bundleno = 75 (0x4b), region = 113 }
  0x40 LB: >>> { %s431_s19 = sld [smem:[#allocation6 + %s1441_s18]]  ;;  %s427_s18 = sadd.s32 1, %s1441_s18   ;;  %s1441_s18 = sphi %s1439_s18, %s427_s18   ;;  %v1437_v2 = vphi %v1435_v2, %v1436_v2  }
  0x41   : >>> { %p426_p2 = scmp.ge.s32.totalorder %s427_s18, %s423_s17 }
  0x44   : >> { %429 = sbr.rel (!%p426_p2) target bundleno = 64 (0x40), region = 119 }
  0x46   : >>> { %s432_s0 = scalar_lea.vmem %s1836_s2, %s431_s19 }
  0x47   : >>> { %v433_v3 = vld [vmem:[%s432_s0] sm:$0x1] }
  0x48   : >>> { %v434_v4 = vadd.f32 %v1437_v2, %v433_v3  }
  0x4a   : >>> { %v1436_v2 = vmov %v434_v4   ;;  %v1444_v1 = vmov (%p426_p2), %v434_v4  }
  0x4b PF: >> { %s435_s24 = scalar_lea.vmem [#allocation2], %s1433_s29  ;;  %s419_s29 = sadd.s32 1, %s1433_s29   ;;  %v1445_v1 = vphi %v1443_v1, %v1444_v1  }
  0x4c   : >> { %436 = vst [vmem:[%s435_s24] sm:$0x1] %v1445_v1  ;;  %p416_p3 = scmp.ge.s32.totalorder %s419_s29, 8  }
  0x4d   : > { %v441_v5 = vld [vmem:[%s1838_s4] sm:$0xff] (%p416_p3)  ;;  %v442_v6 = vld [vmem:[%s1838_s4 + $0x8] sm:$0xff] (%p416_p3)  ;;  %v443_v7 = vld [vmem:[%s1838_s4 + $0x10] sm:$0xff] (%p416_p3)  ;;  %v1450_v8 = vmov (%p416_p3), 0.0|0.0   ;;  %vm1451_vm0 = vmmov (%p416_p3), 0   ;;  %v1452_v11 = vmov (%p416_p3), 0.0   ;;  %s438_s24 = scalar_lea.vmem (%p416_p3), %s1836_s2, %s1006_s23  ;;  %v646_v60 = vlaneseq (%p416_p3) }
  0x4e   : > { %418 = sbr.rel (!%p416_p3) target bundleno = 47 (0x2f), region = 130  ;;  %1234 = vmatprep.subr.bf16.mxu0 (%p416_p3), %v1450_v8  ;;  %v1235_v9 = vpack.c.bf16 (%p416_p3), %v442_v6, %v441_v5  ;;  %v444_v10 = vld [vmem:[%s1838_s4 + $0x18] sm:$0xff] (%p416_p3)  ;;  %1121 = vmatprep.mubr.msk.f32.mxu0 (%p416_p3), %vm1451_vm0, %v1452_v11  ;;  %v1453_v12 = vmov (%p416_p3), 0   ;;  %v445_v14 = vld [vmem:[%s1838_s4 + $0x20] sm:$0xff] (%p416_p3)  ;;  %v446_v15 = vld [vmem:[%s1838_s4 + $0x28] sm:$0xff] (%p416_p3)  ;;  %vm687_vm2 = vcmask (%p416_p3), 64512  }
  0x4f   : > { %1380 = vset.pattern.permute.xlu0 (%p416_p3), %v1453_v12  ;;  %1258 = vmatprep.subr.bf16.mxu1 (%p416_p3), %v1450_v8  ;;  %v1238_v13 = vpack.c.bf16 (%p416_p3), %v444_v10, %v443_v7  ;;  %v645_v16 = vld [vmem:[%s1554_s28] sm:$0xff] (%p416_p3)  ;;  %v536_v18 = vld [vmem:[%s1840_s6 + $0x8] sm:$0xff] (%p416_p3)  ;;  %v1241_v19 = vpack.c.bf16 (%p416_p3), %v446_v15, %v445_v14  ;;  %v537_v21 = vld [vmem:[%s1840_s6 + $0x10] sm:$0xff] (%p416_p3)  ;;  %v647_v61 = vand.u32 (%p416_p3), 127, %v646_v60  ;;  %p1014_p4 = scmp.ne.s32.totalorder (%p416_p3), %s1544_s22, 1 }
  0x50   : > { %1236 = vmatpush3.bf16.msra.mxu0 (%p416_p3), %v1235_v9  ;;  %1156 = vmatprep.mubr.msk.f32.mxu1 (%p416_p3), %vm1451_vm0, %v1452_v11  ;;  %v535_v17 = vld [vmem:[%s1840_s6] sm:$0xff] (%p416_p3)  ;;  %v538_v22 = vld [vmem:[%s1840_s6 + $0x18] sm:$0xff] (%p416_p3)  ;;  %v447_v23 = vld [vmem:[%s1838_s4 + $0x30] sm:$0xff] (%p416_p3) }
  0x51   : > { %1237 = vmatprep.subr.bf16.mxu0 (%p416_p3), %v1450_v8  ;;  %649 = vperm.xlu0 (%p416_p3), %1380, %v645_v16   ;;  %v1259_v20 = vpack.c.bf16 (%p416_p3), %v536_v18, %v535_v17  ;;  %v448_v24 = vld [vmem:[%s1838_s4 + $0x38] sm:$0xff] (%p416_p3)  ;;  %v1262_v25 = vpack.c.bf16 (%p416_p3), %v538_v22, %v537_v21  ;;  %v539_v26 = vld [vmem:[%s1840_s6 + $0x20] sm:$0xff] (%p416_p3)  ;;  %v540_v27 = vld [vmem:[%s1840_s6 + $0x28] sm:$0xff] (%p416_p3) }
  0x52   : > { %v1244_v28 = vpack.c.bf16 (%p416_p3), %v448_v24, %v447_v23  ;;  %v449_v29 = vld [vmem:[%s1838_s4 + $0x40] sm:$0xff] (%p416_p3)  ;;  %v450_v30 = vld [vmem:[%s1838_s4 + $0x48] sm:$0xff] (%p416_p3)  ;;  %v1265_v31 = vpack.c.bf16 (%p416_p3), %v540_v27, %v539_v26  ;;  %v541_v32 = vld [vmem:[%s1840_s6 + $0x30] sm:$0xff] (%p416_p3) }
  0x53   : > { %1260 = vmatpush3.bf16.msra.mxu1 (%p416_p3), %v1259_v20  ;;  %v542_v33 = vld [vmem:[%s1840_s6 + $0x38] sm:$0xff] (%p416_p3)  ;;  %v1247_v34 = vpack.c.bf16 (%p416_p3), %v450_v30, %v449_v29  ;;  %v451_v35 = vld [vmem:[%s1838_s4 + $0x50] sm:$0xff] (%p416_p3)  ;;  %v543_v38 = vld [vmem:[%s1840_s6 + $0x40] sm:$0xff] (%p416_p3) }
  0x54   : > { %1239 = vmatpush3.bf16.msra.mxu0 (%p416_p3), %v1238_v13  ;;  %1261 = vmatprep.subr.bf16.mxu1 (%p416_p3), %v1450_v8  ;;  %v452_v36 = vld [vmem:[%s1838_s4 + $0x58] sm:$0xff] (%p416_p3)  ;;  %v1268_v37 = vpack.c.bf16 (%p416_p3), %v542_v33, %v541_v32  ;;  %v544_v39 = vld [vmem:[%s1840_s6 + $0x48] sm:$0xff] (%p416_p3)  ;;  %v453_v41 = vld [vmem:[%s1838_s4 + $0x60] sm:$0xff] (%p416_p3) }
  0x55   : > { %1240 = vmatprep.subr.bf16.mxu0 %v1450_v8  ;;  %v1250_v40 = vpack.c.bf16 %v452_v36, %v451_v35  ;;  %v454_v42 = vld [vmem:[%s1838_s4 + $0x68] sm:$0xff]  ;;  %v1271_v43 = vpack.c.bf16 %v544_v39, %v543_v38  ;;  %v545_v44 = vld [vmem:[%s1840_s6 + $0x50] sm:$0xff]  ;;  %v546_v45 = vld [vmem:[%s1840_s6 + $0x58] sm:$0xff]  ;;  %v1454_v22 = vmov (!%p1014_p4), 0.0|0.0   ;;  %vm1455_vm3 = vmmov (!%p1014_p4), 0  }
  0x56   : > { %v1253_v46 = vpack.c.bf16 %v454_v42, %v453_v41  ;;  %v455_v47 = vld [vmem:[%s1838_s4 + $0x70] sm:$0xff]  ;;  %v456_v48 = vld [vmem:[%s1838_s4 + $0x78] sm:$0xff]  ;;  %v1274_v49 = vpack.c.bf16 %v546_v45, %v545_v44  ;;  %v547_v50 = vld [vmem:[%s1840_s6 + $0x60] sm:$0xff] }
  0x57   : > { %1263 = vmatpush3.bf16.msra.mxu1 %v1262_v25  ;;  %v548_v51 = vld [vmem:[%s1840_s6 + $0x68] sm:$0xff]  ;;  %v1256_v52 = vpack.c.bf16 %v456_v48, %v455_v47  ;;  %v437_v53 = vld [vmem:[#allocation2] sm:$0xff]  ;;  %v549_v57 = vld [vmem:[%s1840_s6 + $0x70] sm:$0xff]  ;;  %v1456_v25 = vmov (!%p1014_p4), 0.0  }
  0x58   : > { %1242 = vmatpush3.bf16.msra.mxu0 %v1241_v19  ;;  %1264 = vmatprep.subr.bf16.mxu1 %v1450_v8  ;;  %v439_v54 = vld [vmem:[%s438_s24] sm:$0xff]  ;;  %v1277_v55 = vpack.c.bf16 %v548_v51, %v547_v50  ;;  %v550_v58 = vld [vmem:[%s1840_s6 + $0x78] sm:$0xff]  ;;  %v652_v15 = vld [vmem:[#allocation3] sm:$0xff] }
  0x59   : > { %1243 = vmatprep.subr.bf16.mxu0 %v1450_v8  ;;  %v440_v56 = vadd.f32 %v439_v54, %v437_v53  ;;  %v1280_v59 = vpack.c.bf16 %v550_v58, %v549_v57  ;;  %v1008_v0 = vld [vmem:[%s1839_s5] ss:$0 sm:$0xff]  ;;  %v769_v20 = vld [vmem:[%s1844_s10 + $0x8] sm:$0xff] (!%p1014_p4)  ;;  %v770_v21 = vld [vmem:[%s1844_s10 + $0x10] sm:$0xff] (!%p1014_p4) }
  0x5a   : > { %v1009_v5 = vld [vmem:[%s1841_s7] ss:$0 sm:$0xff]  ;;  %v771_v24 = vld [vmem:[%s1844_s10 + $0x18] sm:$0xff] (!%p1014_p4)  ;;  %v863_v30 = vld [vmem:[%s1846_s12 + $0x8] sm:$0xff] (!%p1014_p4) }
  0x5b   : > { %1266 = vmatpush3.bf16.msra.mxu1 %v1265_v31  ;;  %v1010_v9 = vld [vmem:[%s1842_s8] ss:$0 sm:$0xff]  ;;  %v1286_v26 = vpack.c.bf16 (!%p1014_p4), %v771_v24, %v770_v21  ;;  %v864_v31 = vld [vmem:[%s1846_s12 + $0x10] sm:$0xff] (!%p1014_p4)  ;;  %v865_v32 = vld [vmem:[%s1846_s12 + $0x18] sm:$0xff] (!%p1014_p4) }
  0x5c   : > { %1245 = vmatpush3.bf16.msra.mxu0 %v1244_v28  ;;  %1267 = vmatprep.subr.bf16.mxu1 %v1450_v8  ;;  %v768_v19 = vld [vmem:[%s1844_s10] sm:$0xff] (!%p1014_p4)  ;;  %v773_v28 = vld [vmem:[%s1844_s10 + $0x28] sm:$0xff] (!%p1014_p4)  ;;  %v774_v35 = vld [vmem:[%s1844_s10 + $0x30] sm:$0xff] (!%p1014_p4) }
  0x5d   : > { %1246 = vmatprep.subr.bf16.mxu0 %v1450_v8  ;;  %v1283_v23 = vpack.c.bf16 (!%p1014_p4), %v769_v20, %v768_v19  ;;  %v772_v27 = vld [vmem:[%s1844_s10 + $0x20] sm:$0xff] (!%p1014_p4)  ;;  %v775_v36 = vld [vmem:[%s1844_s10 + $0x38] sm:$0xff] (!%p1014_p4)  ;;  %v867_v39 = vld [vmem:[%s1846_s12 + $0x28] sm:$0xff] (!%p1014_p4) }
  0x5e   : > { %v862_v29 = vld [vmem:[%s1846_s12] sm:$0xff] (!%p1014_p4)  ;;  %v1289_v33 = vpack.c.bf16 (!%p1014_p4), %v773_v28, %v772_v27  ;;  %v777_v42 = vld [vmem:[%s1844_s10 + $0x48] sm:$0xff] (!%p1014_p4)  ;;  %v868_v44 = vld [vmem:[%s1846_s12 + $0x30] sm:$0xff] (!%p1014_p4) }
  0x5f   : > { %1269 = vmatpush3.bf16.msra.mxu1 %v1268_v37  ;;  %v1310_v37 = vpack.c.bf16 (!%p1014_p4), %v865_v32, %v864_v31  ;;  %v866_v38 = vld [vmem:[%s1846_s12 + $0x20] sm:$0xff] (!%p1014_p4)  ;;  %v869_v45 = vld [vmem:[%s1846_s12 + $0x38] sm:$0xff] (!%p1014_p4)  ;;  %v778_v47 = vld [vmem:[%s1844_s10 + $0x50] sm:$0xff] (!%p1014_p4) }
  0x60   : > { %1248 = vmatpush3.bf16.msra.mxu0 %v1247_v34  ;;  %1270 = vmatprep.subr.bf16.mxu1 %v1450_v8  ;;  %v1307_v34 = vpack.c.bf16 (!%p1014_p4), %v863_v30, %v862_v29  ;;  %v776_v41 = vld [vmem:[%s1844_s10 + $0x40] sm:$0xff] (!%p1014_p4)  ;;  %v779_v48 = vld [vmem:[%s1844_s10 + $0x58] sm:$0xff] (!%p1014_p4)  ;;  %v871_v51 = vld [vmem:[%s1846_s12 + $0x48] sm:$0xff] (!%p1014_p4) }
  0x61   : > { %1249 = vmatprep.subr.bf16.mxu0 %v1450_v8  ;;  %v870_v50 = vld [vmem:[%s1846_s12 + $0x40] sm:$0xff] (!%p1014_p4)  ;;  %v781_v54 = vld [vmem:[%s1844_s10 + $0x68] sm:$0xff] (!%p1014_p4)  ;;  %v873_v57 = vld [vmem:[%s1846_s12 + $0x58] sm:$0xff] (!%p1014_p4) }
  0x62   : > { %v780_v53 = vld [vmem:[%s1844_s10 + $0x60] sm:$0xff] (!%p1014_p4)  ;;  %v783_v60 = vld [vmem:[%s1844_s10 + $0x78] sm:$0xff] (!%p1014_p4) }
  0x63   : > { %1272 = vmatpush3.bf16.msra.mxu1 %v1271_v43  ;;  %v1313_v43 = vpack.c.bf16 (!%p1014_p4), %v867_v39, %v866_v38  ;;  %v1301_v58 = vpack.c.bf16 (!%p1014_p4), %v781_v54, %v780_v53 }
  0x64   : > { %1251 = vmatpush3.bf16.msra.mxu0 %v1250_v40  ;;  %1273 = vmatprep.subr.bf16.mxu1 %v1450_v8  ;;  %v1292_v40 = vpack.c.bf16 (!%p1014_p4), %v775_v36, %v774_v35 }
  0x65   : > { %1252 = vmatprep.subr.bf16.mxu0 %v1450_v8 }
  0x67   : > { %1275 = vmatpush3.bf16.msra.mxu1 %v1274_v49  ;;  %v1316_v49 = vpack.c.bf16 (!%p1014_p4), %v869_v45, %v868_v44 }
  0x68   : > { %1254 = vmatpush3.bf16.msra.mxu0 %v1253_v46  ;;  %1276 = vmatprep.subr.bf16.mxu1 %v1450_v8  ;;  %v1295_v46 = vpack.c.bf16 (!%p1014_p4), %v777_v42, %v776_v41 }
  0x69   : > { %1255 = vmatprep.subr.bf16.mxu0 %v1450_v8 }
  0x6b   : > { %1278 = vmatpush3.bf16.msra.mxu1 %v1277_v55  ;;  %v1319_v55 = vpack.c.bf16 (!%p1014_p4), %v871_v51, %v870_v50 }
  0x6c   : > { %1257 = vmatpush3.bf16.msra.mxu0 %v1256_v52  ;;  %1279 = vmatprep.subr.bf16.mxu1 %v1450_v8  ;;  %v1298_v52 = vpack.c.bf16 (!%p1014_p4), %v779_v48, %v778_v47 }
  0x6d   : > { %1159 = vmatprep.subr.mxu0 %v1452_v11 }
  0x6f   : > { %1122 = vmatmul.mubr.f32.vlgmr.msra.gmra.mrb[0].mxu0 %v440_v56  ;;  %1281 = vmatpush3.bf16.msra.mxu1 %v1280_v59  ;;  %v872_v56 = vld [vmem:[%s1846_s12 + $0x50] sm:$0xff] (!%p1014_p4) }
  0x70   : > { %1161 = vmatprep.mubr.msk.f32.mxu0 %vm1451_vm0, %v1452_v11  ;;  %1306 = vmatprep.subr.bf16.mxu1 (!%p1014_p4), %v1454_v22  ;;  %v782_v59 = vld [vmem:[%s1844_s10 + $0x70] sm:$0xff] (!%p1014_p4) }
  0xd0   : > { %v650_v62 = vpop.permute.xlu0 %649 }
  0xd1   : > { %vm651_vm1 = vcmp.eq.s32.totalorder %v647_v61, %v650_v62  ;;  %v1322_v61 = vpack.c.bf16 (!%p1014_p4), %v873_v57, %v872_v56  ;;  %v874_v62 = vld [vmem:[%s1846_s12 + $0x60] sm:$0xff] (!%p1014_p4) }
  0xd2   : > { %v1012_v63 = vsel %vm651_vm1, 1.0, %v1452_v11  ;;  %v1011_v11 = vld [vmem:[%s1843_s9] ss:$0 sm:$0xff] }
  0xd3   : > { %655 = vxpose.xlu0.b32.start.end [1/1] (short) (narrow) %v1012_v63, 8  ;;  %v875_v63 = vld [vmem:[%s1846_s12 + $0x68] sm:$0xff] (!%p1014_p4) }
 0x142   : > { %v530_v1 = vpop.f32.mrb[0].mxu0 }
 0x143   : > { %v531_v2 = vadd.f32 %v1008_v0, %v530_v1  ;;  %v1123_v3 = vpop.f32.mrb[1].mxu0  ;;  %v1304_v0 = vpack.c.bf16 (!%p1014_p4), %v783_v60, %v782_v59  ;;  %v1325_v1 = vpack.c.bf16 (!%p1014_p4), %v875_v63, %v874_v62 }
 0x144   : > { %v876_v3 = vld [vmem:[%s1846_s12 + $0x70] sm:$0xff] (!%p1014_p4) }
 0x145   : > { %v534_v4 = vmax.f32 %v531_v2, 0.0 }
 0x147   : > { %1157 = vmatmul.mubr.f32.vlgmr.msra.gmra.mrb[0].mxu1 %v534_v4  ;;  %v877_v4 = vld [vmem:[%s1846_s12 + $0x78] sm:$0xff] (!%p1014_p4) }
 0x148   : > { %1231 = vmatprep.mubr.msk.f32.mxu1 (!%p1014_p4), %vm1455_vm3, %v1456_v25  ;;  %1308 = vmatpush3.bf16.msra.mxu1 (!%p1014_p4), %v1307_v34 }
 0x149   : > { %1309 = vmatprep.subr.bf16.mxu1 (!%p1014_p4), %v1454_v22 }
 0x14c   : > { %1311 = vmatpush3.bf16.msra.mxu1 (!%p1014_p4), %v1310_v37 }
 0x14d   : > { %1312 = vmatprep.subr.bf16.mxu1 (!%p1014_p4), %v1454_v22 }
 0x150   : > { %1314 = vmatpush3.bf16.msra.mxu1 (!%p1014_p4), %v1313_v43 }
 0x151   : > { %1315 = vmatprep.subr.bf16.mxu1 (!%p1014_p4), %v1454_v22 }
 0x153   : > { %v671_v14 = vpop.trf.xlu0 }
 0x154   : > { %1317 = vmatpush3.bf16.msra.mxu1 (!%p1014_p4), %v1316_v49 }
 0x155   : > { %1318 = vmatprep.subr.bf16.mxu1 (!%p1014_p4), %v1454_v22 }
 0x158   : > { %1320 = vmatpush3.bf16.msra.mxu1 (!%p1014_p4), %v1319_v55 }
 0x159   : > { %1321 = vmatprep.subr.bf16.mxu1 (!%p1014_p4), %v1454_v22 }
 0x15c   : > { %1323 = vmatpush3.bf16.msra.mxu1 (!%p1014_p4), %v1322_v61 }
 0x15d   : > { %1324 = vmatprep.subr.bf16.mxu1 (!%p1014_p4), %v1454_v22 }
 0x160   : > { %1326 = vmatpush3.bf16.msra.mxu1 (!%p1014_p4), %v1325_v1 }
 0x161   : > { %1327 = vmatprep.subr.bf16.mxu1 (!%p1014_p4), %v1454_v22 }
 0x21a   : > { %v624_v6 = vpop.f32.mrb[0].mxu1 }
 0x21b   : > { %v625_v7 = vadd.f32 %v1009_v5, %v624_v6  ;;  %v1158_v8 = vpop.f32.mrb[1].mxu1  ;;  %v1328_v5 = vpack.c.bf16 (!%p1014_p4), %v877_v4, %v876_v3  ;;  %v1015_v6 = vld [vmem:[%s1845_s11] ss:$0 sm:$0xff] (!%p1014_p4) }
 0x21d   : > { %v628_v10 = vmax.f32 %v625_v7, 0.0  ;;  %1329 = vmatpush3.bf16.msra.mxu1 (!%p1014_p4), %v1328_v5 }
 0x21f   : > { %v636_v12 = vmul.f32 %v1010_v9, %v628_v10 }
 0x221   : > { %v644_v13 = vadd.f32 %v1011_v11, %v636_v12  ;;  %v1016_v11 = vld [vmem:[%s1847_s13] ss:$0 sm:$0xff] (!%p1014_p4) }
 0x223   : > { %1160 = vmatpush3.msra.mxu0 %v644_v13 }
 0x224   : > { %1162 = vmatmul.mubr.msk.f32.vlgmr.msra.gmra.mrb[2].mxu0 %vm687_vm2, %v671_v14  ;;  %1282 = vmatprep.subr.bf16.mxu0 (!%p1014_p4), %v1454_v22 }
 0x225   : > { %1196 = vmatprep.mubr.msk.f32.mxu0 (!%p1014_p4), %vm1455_vm3, %v1456_v25  ;;  %1284 = vmatpush3.bf16.msra.mxu0 (!%p1014_p4), %v1283_v23 }
 0x226   : > { %1285 = vmatprep.subr.bf16.mxu0 (!%p1014_p4), %v1454_v22 }
 0x229   : > { %1287 = vmatpush3.bf16.msra.mxu0 (!%p1014_p4), %v1286_v26 }
 0x22a   : > { %1288 = vmatprep.subr.bf16.mxu0 (!%p1014_p4), %v1454_v22 }
 0x22d   : > { %1290 = vmatpush3.bf16.msra.mxu0 (!%p1014_p4), %v1289_v33 }
 0x22e   : > { %1291 = vmatprep.subr.bf16.mxu0 (!%p1014_p4), %v1454_v22 }
 0x231   : > { %1293 = vmatpush3.bf16.msra.mxu0 (!%p1014_p4), %v1292_v40 }
 0x232   : > { %1294 = vmatprep.subr.bf16.mxu0 (!%p1014_p4), %v1454_v22 }
 0x235   : > { %1296 = vmatpush3.bf16.msra.mxu0 (!%p1014_p4), %v1295_v46 }
 0x236   : > { %1297 = vmatprep.subr.bf16.mxu0 (!%p1014_p4), %v1454_v22 }
 0x239   : > { %1299 = vmatpush3.bf16.msra.mxu0 (!%p1014_p4), %v1298_v52 }
 0x23a   : > { %1300 = vmatprep.subr.bf16.mxu0 (!%p1014_p4), %v1454_v22 }
 0x23d   : > { %1302 = vmatpush3.bf16.msra.mxu0 (!%p1014_p4), %v1301_v58 }
 0x23e   : > { %1303 = vmatprep.subr.bf16.mxu0 (!%p1014_p4), %v1454_v22 }
 0x241   : > { %1305 = vmatpush3.bf16.msra.mxu0 (!%p1014_p4), %v1304_v0 }
 0x2f4   : > { %766 = sbr.rel (%p1014_p4) target bundleno = 1201 (0x4b1), region = 90 }
 0x2f7   : > { %v757_v16 = vpop.f32.mrb[2].mxu0 }
 0x2f8   : > { %v761_v17 = vadd.f32 %v757_v16, %v652_v15  ;;  %v1163_v18 = vpop.f32.mrb[3].mxu0 }
 0x2fa   : > { %762 = vst [vmem:[#allocation3] sm:$0xff] %v761_v17 }
 0x301   : > { %v767_v2 = vld [vmem:[#allocation3] sm:$0xff] }
 0x302   : > { %1197 = vmatmul.mubr.f32.vlgmr.msra.gmra.mrb[0].mxu0 %v767_v2 }
 0x3d5   : > { %v857_v7 = vpop.f32.mrb[0].mxu0 }
 0x3d6   : > { %v858_v8 = vadd.f32 %v1015_v6, %v857_v7  ;;  %v1198_v9 = vpop.f32.mrb[1].mxu0 }
 0x3d8   : > { %v861_v10 = vmax.f32 %v858_v8, 0.0 }
 0x3da   : > { %1232 = vmatmul.mubr.f32.vlgmr.msra.gmra.mrb[0].mxu1 %v861_v10 }
 0x4ad   : > { %v951_v12 = vpop.f32.mrb[0].mxu1 }
 0x4ae   : > { %v952_v13 = vadd.f32 %v1016_v11, %v951_v12  ;;  %v1233_v14 = vpop.f32.mrb[1].mxu1 }
 0x4b0   : > { %955 = vst [vmem:[%s1848_s14] sm:$0xff] %v952_v13 }
 0x4b1 PF: > { %s34_s1 = sadd.s32 1, %s1429_s1  }
 0x4b2   : > { %p31_p5 = scmp.ge.s32.totalorder %s34_s1, 4  }
 0x4b4   :  { %33 = sbr.rel (!%p31_p5) target bundleno = 26 (0x1a), region = 141 }

</bundles_post_ra>
